<compile_context>
chip_gen: v7x
topology: tpu7x:2x2x1
jax: 0.10.0
libtpu: 0.0.40
codegen_flags: <defaults>
</compile_context>

<pallas_src>
import jax
import jax.numpy as jnp
from jax.experimental import pallas as pl
from jax.experimental.pallas import tpu as pltpu


def _round_up(n, m):
    return ((n + m - 1) // m) * m


def _make_kernel(use_vpu_fc2):
    def mlp_kernel(x_ref, w1_ref, b1_ref, w2_ref, b2_ref, o_ref):
        # In-kernel cast: x is read from HBM exactly once at producer
        # precision; the VPU convert hides under the MXU matmul.
        x = x_ref[...].astype(jnp.bfloat16)
        # fc1 on the MXU: bf16 operands, f32 accumulation.
        h = jnp.dot(x, w1_ref[...], preferred_element_type=jnp.float32)
        # Bias + ReLU in f32 on the VPU.
        h = jnp.maximum(h + b1_ref[...], 0.0)
        if use_vpu_fc2:
            # fc2 with num_classes == 1: a (TB,256)@(256,1) matmul would waste
            # 255/256 MXU output columns. VPU multiply + lane reduction
            # instead; w2_ref is the weight column laid out as a (1, H) row.
            z = jnp.sum(h * w2_ref[...], axis=-1, keepdims=True)
        else:
            # General num_classes fallback: keep it on the MXU.
            z = jnp.dot(h.astype(jnp.bfloat16), w2_ref[...],
                        preferred_element_type=jnp.float32)
        z = z + b2_ref[...]
        o_ref[...] = jax.nn.sigmoid(z).astype(o_ref.dtype)
    return mlp_kernel


def classification_mlp(x, w1, b1, w2, b2, *, block_rows=4096):
    """Fused MLP forward pass.

    x : (B, input_size)            float32 (or bfloat16)
    w1: (input_size, hidden_size)  float32
    b1: (1, hidden_size)           float32
    w2: (hidden_size, num_classes) float32
    b2: (1, num_classes)           float32
    returns: (B, num_classes)      float32
    """
    B, D = x.shape
    H = w1.shape[1]
    C = w2.shape[1]

    # Resident fc1 weight as bf16 (one-time 256 KiB convert; halves its VMEM
    # footprint and feeds the MXU natively).
    w1_bf = w1.astype(jnp.bfloat16)

    use_vpu_fc2 = (C == 1)
    if use_vpu_fc2:
        w2_arg = w2.reshape(1, H).astype(jnp.float32)   # row layout for VPU path
        w2_block = (1, H)
    else:
        w2_arg = w2.astype(jnp.bfloat16)
        w2_block = (H, C)

    # --- Batch tiling -------------------------------------------------------
    # Tiles are multiples of 16 sublanes (valid for f32 and bf16 x). Clamp the
    # tile so 2x double-buffered x tiles + the f32 h intermediate stay far
    # below the 32 MiB scoped-VMEM default (v7x has only 64 MiB physical).
    SUBLANE = 16
    MIN_SPLIT = 512   # below this, splitting across 2 TensorCores buys nothing
    block_rows = max(SUBLANE, (min(block_rows, 4096) // SUBLANE) * SUBLANE)

    if B <= block_rows and B <= MIN_SPLIT:
        TB = B                                    # single full-batch block
    else:
        # Guarantee >=2 grid steps so the "parallel" axis shards over v7x's
        # two TensorCores, while capping the tile at block_rows.
        TB = min(block_rows, _round_up(pl.cdiv(B, 2), SUBLANE))
    grid = (pl.cdiv(B, TB),)                      # ragged last block is clipped

    out = pl.pallas_call(
        _make_kernel(use_vpu_fc2),
        out_shape=jax.ShapeDtypeStruct((B, C), jnp.float32),
        grid_spec=pltpu.PrefetchScalarGridSpec(
            num_scalar_prefetch=0,
            grid=grid,
            in_specs=[
                pl.BlockSpec((TB, D), lambda i: (i, 0)),     # streamed x tile
                pl.BlockSpec((D, H), lambda i: (0, 0)),      # resident w1
                pl.BlockSpec((1, H), lambda i: (0, 0)),      # resident b1
                pl.BlockSpec(w2_block, lambda i: (0, 0)),    # resident w2
                pl.BlockSpec((1, C), lambda i: (0, 0)),      # resident b2
            ],
            out_specs=pl.BlockSpec((TB, C), lambda i: (i, 0)),
        ),
        compiler_params=pltpu.CompilerParams(
            dimension_semantics=("parallel",)),
    )(x, w1_bf, b1, w2_arg, b2)

    return out


def init_params(key, input_size=256, hidden_size=256, num_classes=1):
    """Deterministic init mimicking nn.Linear's uniform(-1/sqrt(fan_in), ...)."""
    k1, k2, k3, k4 = jax.random.split(key, 4)
    bound1 = 1.0 / jnp.sqrt(jnp.float32(input_size))
    bound2 = 1.0 / jnp.sqrt(jnp.float32(hidden_size))
    w1 = jax.random.uniform(k1, (input_size, hidden_size), jnp.float32,
                            -bound1, bound1)
    b1 = jax.random.uniform(k2, (1, hidden_size), jnp.float32,
                            -bound1, bound1)
    w2 = jax.random.uniform(k3, (hidden_size, num_classes), jnp.float32,
                            -bound2, bound2)
    b2 = jax.random.uniform(k4, (1, num_classes), jnp.float32,
                            -bound2, bound2)
    return w1, b1, w2, b2


def _reference(x, w1, b1, w2, b2):
    return jax.nn.sigmoid(jnp.maximum(x @ w1 + b1, 0.0) @ w2 + b2)


if __name__ == "__main__":
    input_size, hidden_size, num_classes = 256, 256, 1

    key = jax.random.PRNGKey(0)
    kx1, kx2, kp = jax.random.split(key, 3)
    w1, b1, w2, b2 = init_params(kp, input_size, hidden_size, num_classes)

    # Case 1: tiny batch, single grid step (block == full array).
    x_small = jax.random.normal(kx1, (8, input_size), jnp.float32)
    out_small = jax.block_until_ready(
        classification_mlp(x_small, w1, b1, w2, b2))
    ref_small = _reference(x_small, w1, b1, w2, b2)
    assert out_small.shape == (8, num_classes)
    # bf16 matmul operands with f32 accumulation -> loosened tolerance.
    assert jnp.allclose(out_small, ref_small, atol=1e-2, rtol=1e-2)

    # Case 2: B % TB != 0 -> multi-step pipelined grid with a ragged (clipped)
    # last block; exercises the pad-free cdiv path end-to-end.
    x_big = jax.random.normal(kx2, (200, input_size), jnp.float32)
    out_big = jax.block_until_ready(
        classification_mlp(x_big, w1, b1, w2, b2, block_rows=64))
    ref_big = _reference(x_big, w1, b1, w2, b2)
    assert out_big.shape == (200, num_classes)
    assert jnp.allclose(out_big, ref_big, atol=1e-2, rtol=1e-2)

    print("KERNEL_OK")
</pallas_src>

<mosaic_0001>
module attributes {stable_mosaic.version = 11 : i64} {
  func.func @mlp_kernel(%arg0: i32, %arg1: memref<8x256xf32, #tpu.memory_space<vmem>>, %arg2: memref<256x256xbf16, #tpu.memory_space<vmem>>, %arg3: memref<1x256xf32, #tpu.memory_space<vmem>>, %arg4: memref<1x256xf32, #tpu.memory_space<vmem>>, %arg5: memref<1x1xf32, #tpu.memory_space<vmem>>, %arg6: memref<8x1xf32, #tpu.memory_space<vmem>>) attributes {dimension_semantics = [#tpu.dimension_semantics<parallel>], iteration_bounds = array<i64: 1>, scalar_prefetch = 0 : i64, scratch_operands = 0 : i64, tpu.core_type = #tpu.core_type<tc>, window_params = [{transform_indices = @transform_0, window_bounds = array<i64: 8, 256>}, {pipeline_mode = #tpu.pipeline_mode<synchronous>, transform_indices = @transform_1, window_bounds = array<i64: 256, 256>}, {pipeline_mode = #tpu.pipeline_mode<synchronous>, transform_indices = @transform_2, window_bounds = array<i64: 1, 256>}, {pipeline_mode = #tpu.pipeline_mode<synchronous>, transform_indices = @transform_3, window_bounds = array<i64: 1, 256>}, {pipeline_mode = #tpu.pipeline_mode<synchronous>, transform_indices = @transform_4, window_bounds = array<i64: 1, 1>}, {transform_indices = @transform_5, window_bounds = array<i64: 8, 1>}]} {
    %c0 = arith.constant 0 : index
    %c0_0 = arith.constant 0 : index
    %0 = vector.load %arg1[%c0, %c0_0] : memref<8x256xf32, #tpu.memory_space<vmem>>, vector<8x256xf32>
    %1 = arith.truncf %0 : vector<8x256xf32> to vector<8x256xbf16>
    %c0_1 = arith.constant 0 : index
    %c0_2 = arith.constant 0 : index
    %2 = vector.load %arg2[%c0_1, %c0_2] : memref<256x256xbf16, #tpu.memory_space<vmem>>, vector<256x256xbf16>
    %cst = arith.constant dense<0.000000e+00> : vector<8x256xf32>
    %3 = tpu.matmul %1, %2, %cst {dimension_numbers = #tpu.dot_dimension_numbers<[1], [0], [0], [1], [0, 0, 1, 1], [], []>} : vector<8x256xbf16>, vector<256x256xbf16>, vector<8x256xf32> -> vector<8x256xf32>
    %c0_3 = arith.constant 0 : index
    %c0_4 = arith.constant 0 : index
    %4 = vector.load %arg3[%c0_3, %c0_4] : memref<1x256xf32, #tpu.memory_space<vmem>>, vector<1x256xf32>
    %5 = vector.broadcast %4 : vector<1x256xf32> to vector<8x256xf32>
    %6 = arith.addf %3, %5 : vector<8x256xf32>
    %cst_5 = arith.constant 0.000000e+00 : f32
    %7 = vector.broadcast %cst_5 : f32 to vector<8x256xf32>
    %8 = arith.maximumf %6, %7 : vector<8x256xf32>
    %c0_6 = arith.constant 0 : index
    %c0_7 = arith.constant 0 : index
    %9 = vector.load %arg4[%c0_6, %c0_7] : memref<1x256xf32, #tpu.memory_space<vmem>>, vector<1x256xf32>
    %10 = vector.broadcast %9 : vector<1x256xf32> to vector<8x256xf32>
    %11 = arith.mulf %8, %10 : vector<8x256xf32>
    %cst_8 = arith.constant dense<0.000000e+00> : vector<8xf32>
    %12 = vector.multi_reduction <add>, %11, %cst_8 [1] : vector<8x256xf32> to vector<8xf32>
    %13 = vector.shape_cast %12 : vector<8xf32> to vector<8x1xf32>
    %c0_9 = arith.constant 0 : index
    %c0_10 = arith.constant 0 : index
    %14 = vector.load %arg5[%c0_9, %c0_10] : memref<1x1xf32, #tpu.memory_space<vmem>>, vector<1x1xf32>
    %15 = vector.broadcast %14 : vector<1x1xf32> to vector<8x1xf32>
    %16 = arith.addf %13, %15 : vector<8x1xf32>
    %17 = arith.negf %16 : vector<8x1xf32>
    %18 = math.exp %17 : vector<8x1xf32>
    %cst_11 = arith.constant 1.000000e+00 : f32
    %19 = vector.broadcast %cst_11 : f32 to vector<8x1xf32>
    %20 = arith.addf %19, %18 : vector<8x1xf32>
    %21 = arith.divf %19, %20 : vector<8x1xf32>
    %c0_12 = arith.constant 0 : index
    %c0_13 = arith.constant 0 : index
    %22 = vector.load %arg6[%c0_12, %c0_13] : memref<8x1xf32, #tpu.memory_space<vmem>>, vector<8x1xf32>
    tpu.vector_store %arg6[%c0_12, %c0_13], %21 {strides = array<i32>} : memref<8x1xf32, #tpu.memory_space<vmem>>, vector<8x1xf32>,
    return
  }
  func.func @transform_0(%arg0: i32) -> (i32, i32) {
    %c0_i32 = arith.constant 0 : i32
    %c0_i32_0 = arith.constant 0 : i32
    return %arg0, %c0_i32 : i32, i32
  }
  func.func @transform_1(%arg0: i32) -> (i32, i32) {
    %c0_i32 = arith.constant 0 : i32
    %c0_i32_0 = arith.constant 0 : i32
    %c0_i32_1 = arith.constant 0 : i32
    return %c0_i32, %c0_i32_0 : i32, i32
  }
  func.func @transform_2(%arg0: i32) -> (i32, i32) {
    %c0_i32 = arith.constant 0 : i32
    %c0_i32_0 = arith.constant 0 : i32
    %c0_i32_1 = arith.constant 0 : i32
    return %c0_i32, %c0_i32_0 : i32, i32
  }
  func.func @transform_3(%arg0: i32) -> (i32, i32) {
    %c0_i32 = arith.constant 0 : i32
    %c0_i32_0 = arith.constant 0 : i32
    %c0_i32_1 = arith.constant 0 : i32
    return %c0_i32, %c0_i32_0 : i32, i32
  }
  func.func @transform_4(%arg0: i32) -> (i32, i32) {
    %c0_i32 = arith.constant 0 : i32
    %c0_i32_0 = arith.constant 0 : i32
    %c0_i32_1 = arith.constant 0 : i32
    return %c0_i32, %c0_i32_0 : i32, i32
  }
  func.func @transform_5(%arg0: i32) -> (i32, i32) {
    %c0_i32 = arith.constant 0 : i32
    %c0_i32_0 = arith.constant 0 : i32
    return %arg0, %c0_i32 : i32, i32
  }
}

</mosaic_0001>

<bundles_post_ra>
// kernel: tpu_custom_call.1
= control target key start
LH: loop header
LB: loop body
LE: loop exit
PB: predicated region body
PF: predicated region fallthrough
CT: control target
= control target key end

     0   :  { %s553_s0 = inlined_call_operand.hbm [shape: f32[8,256], index: 0, kind: input, shape index: {}]   ;;  %s554_s1 = inlined_call_operand.hbm [shape: bf16[256,256], index: 1, kind: input, shape index: {}]   ;;  %s555_s2 = inlined_call_operand.vmem [shape: f32[1,256], index: 2, kind: input, shape index: {}]   ;;  %s556_s3 = inlined_call_operand.vmem [shape: f32[1,256], index: 3, kind: input, shape index: {}]   ;;  %s557_s4 = inlined_call_operand.<no memory space> [shape: f32[1,1], index: 4, kind: input, shape index: {}]   ;;  %s558_s5 = inlined_call_operand.vmem [shape: f32[8,1], index: 5, kind: output, shape index: {}]  }
   0x1   :  { %v10_v0 = vstv %s557_s4 }
   0x2   :  { %11 = vst [vmem:[#allocation2] sm:$0x1] %v10_v0 }
   0x3   :  { %12 = vsyncpa [#allocation4], 0 }
   0x4   :  { %13 = vsyncpa [#allocation6], 0  ;;  %s476_s20 = smov [#allocation3]   ;;  %s477_s22 = smov [#allocation5]  }
   0x5   :  { %s20_s21 = sshll.u32 %s476_s20, 4  ;;  %s29_s23 = sshll.u32 %s477_s22, 4  ;;  %s21_s21 = int_to_ptr.vmem [resolvable:$true] %s20_s21  ;;  %s513_s23 = int_to_ptr.vmem [resolvable:$true] %s29_s23 }
   0x6   :  { %s428_s26 = scalar_lea.hbm %s553_s0, 256 }
   0x7   :  { %p429_p0 = scmp.ne.s32.totalorder %s553_s0, %s428_s26  ;;  %p432_p1 = scmp.lt.u32.totalorder %s428_s26, %s553_s0 }
   0x9   :  { %p434_p2 = pnand %p432_p1, %p429_p0 }
   0xb   :  { %437 = shalt.err (!%p434_p2)
}
   0xc   :  { %s438_s30 = scalar_lea.vmem %s21_s21, 256  ;;  %p443_p4 = scmp.lt.s32.totalorder %s21_s21, %s21_s21 }
   0xd   :  { %p439_p3 = scmp.ne.s32.totalorder %s21_s21, %s438_s30  ;;  %p444_p5 = scmp.lt.s32.totalorder %s438_s30, %s438_s30 }
   0xf   :  { %p445_p6 = por %p444_p5, %p443_p4 }
  0x11   :  { %p446_p7 = pnand %p445_p6, %p439_p3 }
  0x13   :  { %449 = shalt.err (!%p446_p7)
}
  0x14   :  { %23 = dma.hbm_to_vmem [thread:$0]  %s553_s0, 256, %s21_s21, [#allocation4]  }
  0x15   :  { %s450_s10 = scalar_lea.hbm %s554_s1, 4096 }
  0x16   :  { %p451_p8 = scmp.ne.s32.totalorder %s554_s1, %s450_s10  ;;  %p454_p9 = scmp.lt.u32.totalorder %s450_s10, %s554_s1 }
  0x18   :  { %p456_p10 = pnand %p454_p9, %p451_p8 }
  0x1a   :  { %459 = shalt.err (!%p456_p10)
}
  0x1b   :  { %s460_s15 = scalar_lea.vmem %s513_s23, 4096  ;;  %p465_p12 = scmp.lt.s32.totalorder %s513_s23, %s513_s23 }
  0x1c   :  { %p461_p11 = scmp.ne.s32.totalorder %s513_s23, %s460_s15  ;;  %p466_p13 = scmp.lt.s32.totalorder %s460_s15, %s460_s15 }
  0x1e   :  { %p467_p0 = por %p466_p13, %p465_p12 }
  0x20   :  { %p468_p1 = pnand %p467_p0, %p461_p11 }
  0x22   :  { %471 = shalt.err (!%p468_p1)
}
  0x23   :  { %s478_s0 = smov 128   ;;  %s479_s16 = smov 8  }
  0x24   :  { %35 = dma.hbm_to_vmem [thread:$0]  %s554_s1, 4096, %s513_s23, [#allocation6], %s478_s0, %s478_s0, %s479_s16  }
  0x25   :  { %472 = dma.done.wait [#allocation4], 256  }
  0x26   :  { %473 = vsyncadd [#allocation4], 4294967040 }
  0x27   :  { %474 = dma.done.wait [#allocation6], 4096  }
  0x28   :  { %475 = vsyncadd [#allocation6], 4294963200  ;;  %v376_v1 = vld [vmem:[#allocation5 + $0x4] ss:$8 sps:$4 sm:$0xff]   ;;  %v378_v2 = vld [vmem:[#allocation5] ss:$8 sps:$4 sm:$0xff]   ;;  %v86_v37 = vlaneseq }
  0x29   :  { %256 = vmatprep.subr.bf16.mxu0 %v376_v1  ;;  %v379_v3 = vld [vmem:[#allocation5 + $0x14] ss:$8 sps:$4 sm:$0xff]   ;;  %v381_v4 = vld [vmem:[#allocation5 + $0x10] ss:$8 sps:$4 sm:$0xff]   ;;  %v382_v5 = vld [vmem:[#allocation5 + $0x24] ss:$8 sps:$4 sm:$0xff]  }
  0x2a   :  { %257 = vmatpush1.bf16.msra.mxu0 %v378_v2  ;;  %v384_v6 = vld [vmem:[#allocation5 + $0x20] ss:$8 sps:$4 sm:$0xff]   ;;  %v385_v7 = vld [vmem:[#allocation5 + $0x34] ss:$8 sps:$4 sm:$0xff]   ;;  %v387_v8 = vld [vmem:[#allocation5 + $0x30] ss:$8 sps:$4 sm:$0xff]  }
  0x2b   :  { %258 = vmatprep.subr.bf16.mxu0 %v379_v3  ;;  %v388_v9 = vld [vmem:[#allocation5 + $0x44] ss:$8 sps:$4 sm:$0xff]   ;;  %v390_v10 = vld [vmem:[#allocation5 + $0x40] ss:$8 sps:$4 sm:$0xff]   ;;  %v391_v11 = vld [vmem:[#allocation5 + $0x54] ss:$8 sps:$4 sm:$0xff]  }
  0x2c   :  { %v393_v12 = vld [vmem:[#allocation5 + $0x50] ss:$8 sps:$4 sm:$0xff]   ;;  %v394_v13 = vld [vmem:[#allocation5 + $0x64] ss:$8 sps:$4 sm:$0xff]   ;;  %v396_v16 = vld [vmem:[#allocation5 + $0x60] ss:$8 sps:$4 sm:$0xff]  }
  0x2d   :  { %v49_v14 = vld [vmem:[#allocation3 + $0x8] sm:$0xff]  ;;  %v400_v19 = vld [vmem:[#allocation5 + $0x84] ss:$8 sps:$4 sm:$0xff]   ;;  %v402_v20 = vld [vmem:[#allocation5 + $0x80] ss:$8 sps:$4 sm:$0xff]   ;;  %v87_v38 = vshrl.u32 %v86_v37, 7 }
  0x2e   :  { %259 = vmatpush1.bf16.msra.mxu0 %v381_v4  ;;  %v51_v15 = vpack.c.bf16 %v49_v14, %v49_v14  ;;  %v397_v17 = vld [vmem:[#allocation5 + $0x74] ss:$8 sps:$4 sm:$0xff]   ;;  %v399_v18 = vld [vmem:[#allocation5 + $0x70] ss:$8 sps:$4 sm:$0xff]   ;;  %v406_v23 = vld [vmem:[#allocation5 + $0xa4] ss:$8 sps:$4 sm:$0xff]  }
  0x2f   :  { %260 = vmatprep.subr.bf16.mxu0 %v382_v5  ;;  %v403_v21 = vld [vmem:[#allocation5 + $0x94] ss:$8 sps:$4 sm:$0xff]   ;;  %v405_v22 = vld [vmem:[#allocation5 + $0x90] ss:$8 sps:$4 sm:$0xff]   ;;  %v408_v24 = vld [vmem:[#allocation5 + $0xa0] ss:$8 sps:$4 sm:$0xff]  }
  0x30   :  { %288 = vmatprep.mubr.bf16.mxu0 %v51_v15  ;;  %v409_v25 = vld [vmem:[#allocation5 + $0xb4] ss:$8 sps:$4 sm:$0xff]   ;;  %v411_v26 = vld [vmem:[#allocation5 + $0xb0] ss:$8 sps:$4 sm:$0xff]   ;;  %v412_v27 = vld [vmem:[#allocation5 + $0xc4] ss:$8 sps:$4 sm:$0xff]  }
  0x31   :  { %v414_v28 = vld [vmem:[#allocation5 + $0xc0] ss:$8 sps:$4 sm:$0xff]   ;;  %v415_v29 = vld [vmem:[#allocation5 + $0xd4] ss:$8 sps:$4 sm:$0xff]   ;;  %v417_v30 = vld [vmem:[#allocation5 + $0xd0] ss:$8 sps:$4 sm:$0xff]  }
  0x32   :  { %261 = vmatpush1.bf16.msra.mxu0 %v384_v6  ;;  %v418_v31 = vld [vmem:[#allocation5 + $0xe4] ss:$8 sps:$4 sm:$0xff]   ;;  %v420_v32 = vld [vmem:[#allocation5 + $0xe0] ss:$8 sps:$4 sm:$0xff]   ;;  %v421_v33 = vld [vmem:[#allocation5 + $0xf4] ss:$8 sps:$4 sm:$0xff]  }
  0x33   :  { %262 = vmatprep.subr.bf16.mxu0 %v385_v7  ;;  %v423_v34 = vld [vmem:[#allocation5 + $0xf0] ss:$8 sps:$4 sm:$0xff]   ;;  %v88_v39 = vsub.s32 0, %v87_v38  ;;  %v92_v41 = vsub.s32 1, %v87_v38  ;;  %v370_v58 = vld [vmem:[#allocation2] ss:$0 sm:$0xff] }
  0x34   :  { %v48_v35 = vld [vmem:[#allocation3] sm:$0xff]  ;;  %vm330_vm0 = vcmask 7168  }
  0x35   :  { %v50_v36 = vpack.c.bf16 %v48_v35, %v48_v35  ;;  %v84_v40 = vld [vmem:[%s555_s2] sm:$0x3] }
  0x36   :  { %263 = vmatpush1.bf16.msra.mxu0 %v387_v8  ;;  %v89_v42 = vrot.slane %v84_v40, %v88_v39  ;;  %v93_v43 = vrot.slane %v84_v40, %v92_v41  ;;  %v299_v44 = vld [vmem:[%s556_s3] sm:$0x3] }
  0x37   :  { %264 = vmatprep.subr.bf16.mxu0 %v388_v9  ;;  %v304_v48 = vrot.slane %v299_v44, %v88_v39  ;;  %v308_v51 = vrot.slane %v299_v44, %v92_v41 }
  0x3a   :  { %265 = vmatpush1.bf16.msra.mxu0 %v390_v10 }
  0x3b   :  { %266 = vmatprep.subr.bf16.mxu0 %v391_v11 }
  0x3e   :  { %267 = vmatpush1.bf16.msra.mxu0 %v393_v12 }
  0x3f   :  { %268 = vmatprep.subr.bf16.mxu0 %v394_v13 }
  0x42   :  { %269 = vmatpush1.bf16.msra.mxu0 %v396_v16 }
  0x43   :  { %270 = vmatprep.subr.bf16.mxu0 %v397_v17 }
  0x46   :  { %271 = vmatpush1.bf16.msra.mxu0 %v399_v18 }
  0x47   :  { %272 = vmatprep.subr.bf16.mxu0 %v400_v19 }
  0x4a   :  { %273 = vmatpush1.bf16.msra.mxu0 %v402_v20 }
  0x4b   :  { %274 = vmatprep.subr.bf16.mxu0 %v403_v21 }
  0x4e   :  { %275 = vmatpush1.bf16.msra.mxu0 %v405_v22 }
  0x4f   :  { %276 = vmatprep.subr.bf16.mxu0 %v406_v23 }
  0x52   :  { %277 = vmatpush1.bf16.msra.mxu0 %v408_v24 }
  0x53   :  { %278 = vmatprep.subr.bf16.mxu0 %v409_v25 }
  0x56   :  { %279 = vmatpush1.bf16.msra.mxu0 %v411_v26 }
  0x57   :  { %280 = vmatprep.subr.bf16.mxu0 %v412_v27 }
  0x5a   :  { %281 = vmatpush1.bf16.msra.mxu0 %v414_v28 }
  0x5b   :  { %282 = vmatprep.subr.bf16.mxu0 %v415_v29 }
  0x5e   :  { %283 = vmatpush1.bf16.msra.mxu0 %v417_v30 }
  0x5f   :  { %284 = vmatprep.subr.bf16.mxu0 %v418_v31 }
  0x62   :  { %285 = vmatpush1.bf16.msra.mxu0 %v420_v32 }
  0x63   :  { %286 = vmatprep.subr.bf16.mxu0 %v421_v33 }
  0x66   :  { %287 = vmatpush1.bf16.msra.mxu0 %v423_v34 }
  0x69   :  { %289 = vmatmul.mubr.bf16.vlgmr.msra.gmra.mrb[0].mxu0 %v50_v36 }
 0x13c   :  { %v290_v45 = vpop.f32.mrb[0].mxu0 }
 0x13d   :  { %v291_v46 = vadd.f32 %v290_v45, %v89_v42  ;;  %v292_v47 = vpop.f32.mrb[1].mxu0 }
 0x13e   :  { %v293_v49 = vadd.f32 %v292_v47, %v93_v43  ;;  %v294_v50 = vpop.f32.mrb[2].mxu0 }
 0x13f   :  { %v297_v52 = vmax.f32 %v291_v46, 0.0  ;;  %v295_v53 = vpop.f32.mrb[3].mxu0 }
 0x140   :  { %v298_v54 = vmax.f32 %v293_v49, 0.0 }
 0x141   :  { %v311_v55 = vmul.f32 %v304_v48, %v297_v52 }
 0x142   :  { %v312_v56 = vmul.f32 %v308_v51, %v298_v54 }
 0x144   :  { %v313_v57 = vadd.f32 %v312_v56, %v311_v55 }
 0x146   :  { %314 = vadd.xlane.f32.xlu0 %v313_v57 }
 0x1d3   :  { %v315_v59 = vpop.xlane.xlu0 %314 }
 0x1d4   :  { %v323_v60 = vadd.f32 %v370_v58, %v315_v59 }
 0x1d6   :  { %v371_v61 = vmul.f32 -1.442695, %v323_v60 }
 0x1d8   :  { %424 = vpow2.f32 %v371_v61 }
 0x1e2   :  { %v425_v62 = vpop.eup %424 }
 0x1e3   :  { %v327_v63 = vadd.f32 1.0, %v425_v62 }
 0x1e5   :  { %426 = vrcp.f32 %v327_v63 }
 0x1ef   :  { %v427_v0 = vpop.eup %426 }
 0x1f0   :  { %331 = vst.msk [vmem:[%s558_s5] sm:$0xff] %vm330_vm0, %v427_v0 }
 0x1f1   :  { %336 = vsyncpa [#allocation4], 1 }
 0x1f2   :  { %337 = vsyncpa [#allocation6], 1 }

</bundles_post_ra>
